<compile_context>
chip_gen: v5e
topology: v5e:2x2
jax: 0.10.0
libtpu: 0.0.40
codegen_flags: <defaults>
</compile_context>

<pallas_src>
import jax
import jax.numpy as jnp
import numpy as np
from jax.experimental import pallas as pl
from jax.experimental.pallas import tpu as pltpu

BN_EPS = 1e-5
_VMEM_LIMIT = 32 * 1024 * 1024


def _round_up(x, d):
    return (x + d - 1) // d * d


# --------------- Pass 1: conv-as-matmul + per-channel sum / sumsq -----------

def _matmul_stats_kernel(a_ref, w_ref, y_ref, sum_ref, ssq_ref):
    # a_ref   : [Kp, TM]  bf16   im2col^T tile (lane dim = M -> lane dense)
    # w_ref   : [Cp, Kp]  bf16   conv weight as a matrix
    # y_ref   : [Cp, TM]  f32    conv output tile (transposed layout)
    # sum_ref : [Cp, 1]   f32    per-channel sum   (resident accumulator)
    # ssq_ref : [Cp, 1]   f32    per-channel sumsq (resident accumulator)
    @pl.when(pl.program_id(0) == 0)
    def _init():
        sum_ref[...] = jnp.zeros_like(sum_ref)
        ssq_ref[...] = jnp.zeros_like(ssq_ref)

    y = jnp.dot(w_ref[...], a_ref[...], preferred_element_type=jnp.float32)
    y_ref[...] = y
    sum_ref[...] += jnp.sum(y, axis=1, keepdims=True)
    ssq_ref[...] += jnp.sum(y * y, axis=1, keepdims=True)


# --------------- Pass 2: fused batch-norm affine + ReLU ---------------------

def _bn_relu_kernel(y_ref, scale_ref, shift_ref, o_ref):
    # y_ref: [Cp, TM] f32; scale/shift: [Cp, 1] f32 (lane-broadcast)
    o_ref[...] = jnp.maximum(y_ref[...] * scale_ref[...] + shift_ref[...], 0.0)


# --------------- Wrapper ------------------------------------------------------

def _im2col_T(x_pad, oh, ow):
    """x_pad: [N, Cin, H+2, W+2] -> A^T: [Cin*9, N*OH*OW] (row = cin*9+kh*3+kw)."""
    n, cin = x_pad.shape[0], x_pad.shape[1]
    taps = []
    for kh in range(3):
        for kw in range(3):
            taps.append(x_pad[:, :, kh:kh + 2 * oh - 1:2, kw:kw + 2 * ow - 1:2])
    p = jnp.stack(taps, axis=0)             # [9, N, Cin, OH, OW]
    p = jnp.transpose(p, (2, 0, 1, 3, 4))   # [Cin, 9, N, OH, OW]
    return p.reshape(cin * 9, n * oh * ow)  # [K, M]


def gameboy_block(x, w, b, gamma, beta, *, tile_m=1024):
    """x: [N, Cin, H, W] f32 -> relu(bn(conv(x))) as [N, Cout, OH, OW] f32."""
    # Conv bias is mathematically cancelled by training-mode BN mean subtraction.
    del b
    n, cin, h, wd = x.shape
    cout = w.shape[0]
    oh = (h + 2 - 3) // 2 + 1
    ow = (wd + 2 - 3) // 2 + 1
    m, k = n * oh * ow, cin * 9

    tm = min(tile_m, _round_up(m, 128))     # lane-aligned M tile
    m_pad = _round_up(m, tm)
    nt = m_pad // tm
    k_pad = _round_up(k, 8)                 # sublane-aligned K
    c_pad = _round_up(cout, 8)              # sublane-aligned Cout

    x_hw_pad = jnp.pad(x, ((0, 0), (0, 0), (1, 1), (1, 1)))
    a_t = _im2col_T(x_hw_pad, oh, ow)                                   # [K, M]
    a_t = jnp.pad(a_t, ((0, k_pad - k), (0, m_pad - m))).astype(jnp.bfloat16)
    w_t = jnp.pad(w.reshape(cout, k), ((0, c_pad - cout), (0, k_pad - k)))
    w_t = w_t.astype(jnp.bfloat16)                                      # [Cp, Kp]

    # ---- pass 1: tiled matmul + global per-channel sum / sumsq -------------
    y_t, ch_sum, ch_ssq = pl.pallas_call(
        _matmul_stats_kernel,
        out_shape=(
            jax.ShapeDtypeStruct((c_pad, m_pad), jnp.float32),
            jax.ShapeDtypeStruct((c_pad, 1), jnp.float32),
            jax.ShapeDtypeStruct((c_pad, 1), jnp.float32),
        ),
        grid=(nt,),
        in_specs=[
            pl.BlockSpec((k_pad, tm), lambda i: (0, i)),
            pl.BlockSpec((c_pad, k_pad), lambda i: (0, 0)),
        ],
        out_specs=(
            pl.BlockSpec((c_pad, tm), lambda i: (0, i)),
            pl.BlockSpec((c_pad, 1), lambda i: (0, 0)),
            pl.BlockSpec((c_pad, 1), lambda i: (0, 0)),
        ),
        compiler_params=pltpu.CompilerParams(
            dimension_semantics=("arbitrary",),      # stats accumulate over M
            vmem_limit_bytes=_VMEM_LIMIT),
    )(a_t, w_t)

    # ---- tiny stat finalization (per-channel scalars) in plain JAX ---------
    mean = ch_sum[:, 0] / m
    var = jnp.maximum(ch_ssq[:, 0] / m - mean * mean, 0.0)
    inv_std = jax.lax.rsqrt(var + BN_EPS)
    gamma_p = jnp.pad(gamma, (0, c_pad - cout), constant_values=1.0)
    beta_p = jnp.pad(beta, (0, c_pad - cout))
    scale = (gamma_p * inv_std).reshape(c_pad, 1).astype(jnp.float32)
    shift = (beta_p - mean * gamma_p * inv_std).reshape(c_pad, 1).astype(jnp.float32)

    # ---- pass 2: normalize + ReLU (independent M tiles -> "parallel") ------
    out_t = pl.pallas_call(
        _bn_relu_kernel,
        out_shape=jax.ShapeDtypeStruct((c_pad, m_pad), jnp.float32),
        grid=(nt,),
        in_specs=[
            pl.BlockSpec((c_pad, tm), lambda i: (0, i)),
            pl.BlockSpec((c_pad, 1), lambda i: (0, 0)),
            pl.BlockSpec((c_pad, 1), lambda i: (0, 0)),
        ],
        out_specs=pl.BlockSpec((c_pad, tm), lambda i: (0, i)),
        compiler_params=pltpu.CompilerParams(
            dimension_semantics=("parallel",),
            vmem_limit_bytes=_VMEM_LIMIT),
    )(y_t, scale, shift)

    # [Cp, Mp] -> [Cout, M] -> [Cout, N, OH, OW] -> NCHW
    out = out_t[:cout, :m].reshape(cout, n, oh, ow)
    return jnp.transpose(out, (1, 0, 2, 3))


def _reference(x, w, b, gamma, beta):
    """Pure-JAX reference matching PyTorch F.relu(bn(conv(x))) (train-mode BN)."""
    y = jax.lax.conv_general_dilated(
        x, w, window_strides=(2, 2), padding=((1, 1), (1, 1)),
        dimension_numbers=("NCHW", "OIHW", "NCHW"),
        precision=jax.lax.Precision.HIGHEST)
    y = y + b[None, :, None, None]
    mean = jnp.mean(y, axis=(0, 2, 3), keepdims=True)
    var = jnp.mean((y - mean) ** 2, axis=(0, 2, 3), keepdims=True)
    y_hat = (y - mean) / jnp.sqrt(var + BN_EPS)
    out = gamma[None, :, None, None] * y_hat + beta[None, :, None, None]
    return jnp.maximum(out, 0.0)


if __name__ == "__main__":
    key = jax.random.PRNGKey(0)
    k_x, k_w, k_b = jax.random.split(key, 3)

    N, CIN, COUT, H, W = 2, 4, 8, 16, 16

    x = jax.random.normal(k_x, (N, CIN, H, W), dtype=jnp.float32)
    w = jax.random.normal(k_w, (COUT, CIN, 3, 3), dtype=jnp.float32) * 0.1
    b = jax.random.normal(k_b, (COUT,), dtype=jnp.float32) * 0.1
    gamma = jnp.ones((COUT,), dtype=jnp.float32)   # BatchNorm2d weight init
    beta = jnp.zeros((COUT,), dtype=jnp.float32)   # BatchNorm2d bias init

    out = gameboy_block(x, w, b, gamma, beta)
    jax.block_until_ready(out)

    ref = _reference(x, w, b, gamma, beta)
    # Tolerance reflects bf16 MXU inputs (f32 accumulation) vs the
    # Precision.HIGHEST f32 reference.
    np.testing.assert_allclose(np.asarray(out), np.asarray(ref),
                               rtol=1e-2, atol=1e-2)

    print("KERNEL_OK")
</pallas_src>

<mosaic_0001>
module attributes {stable_mosaic.version = 11 : i64} {
  func.func @_matmul_stats_kernel(%arg0: i32, %arg1: memref<40x128xbf16, #tpu.memory_space<vmem>>, %arg2: memref<8x40xbf16, #tpu.memory_space<vmem>>, %arg3: memref<8x128xf32, #tpu.memory_space<vmem>>, %arg4: memref<8x1xf32, #tpu.memory_space<vmem>>, %arg5: memref<8x1xf32, #tpu.memory_space<vmem>>) attributes {dimension_semantics = [#tpu.dimension_semantics<arbitrary>], iteration_bounds = array<i64: 1>, scalar_prefetch = 0 : i64, scratch_operands = 0 : i64, tpu.core_type = #tpu.core_type<tc>, window_params = [{transform_indices = @transform_0, window_bounds = array<i64: 40, 128>}, {pipeline_mode = #tpu.pipeline_mode<synchronous>, transform_indices = @transform_1, window_bounds = array<i64: 8, 40>}, {transform_indices = @transform_2, window_bounds = array<i64: 8, 128>}, {pipeline_mode = #tpu.pipeline_mode<synchronous>, transform_indices = @transform_3, window_bounds = array<i64: 8, 1>}, {pipeline_mode = #tpu.pipeline_mode<synchronous>, transform_indices = @transform_4, window_bounds = array<i64: 8, 1>}]} {
    %c0_i32 = arith.constant 0 : i32
    %0 = arith.cmpi eq, %arg0, %c0_i32 : i32
    %1 = arith.extui %0 : i1 to i32
    %c0_i32_0 = arith.constant 0 : i32
    %2 = arith.cmpi ne, %1, %c0_i32_0 : i32
    scf.if %2 {
      %cst_16 = arith.constant 0.000000e+00 : f32
      %18 = vector.broadcast %cst_16 : f32 to vector<8x1xf32>
      %c0_17 = arith.constant 0 : index
      %c0_18 = arith.constant 0 : index
      %19 = vector.load %arg4[%c0_17, %c0_18] : memref<8x1xf32, #tpu.memory_space<vmem>>, vector<8x1xf32>
      tpu.vector_store %arg4[%c0_17, %c0_18], %18 {strides = array<i32>} : memref<8x1xf32, #tpu.memory_space<vmem>>, vector<8x1xf32>,
      %cst_19 = arith.constant 0.000000e+00 : f32
      %20 = vector.broadcast %cst_19 : f32 to vector<8x1xf32>
      %c0_20 = arith.constant 0 : index
      %c0_21 = arith.constant 0 : index
      %21 = vector.load %arg5[%c0_20, %c0_21] : memref<8x1xf32, #tpu.memory_space<vmem>>, vector<8x1xf32>
      tpu.vector_store %arg5[%c0_20, %c0_21], %20 {strides = array<i32>} : memref<8x1xf32, #tpu.memory_space<vmem>>, vector<8x1xf32>,
    } else {
    }
    %c0 = arith.constant 0 : index
    %c0_1 = arith.constant 0 : index
    %3 = vector.load %arg2[%c0, %c0_1] : memref<8x40xbf16, #tpu.memory_space<vmem>>, vector<8x40xbf16>
    %c0_2 = arith.constant 0 : index
    %c0_3 = arith.constant 0 : index
    %4 = vector.load %arg1[%c0_2, %c0_3] : memref<40x128xbf16, #tpu.memory_space<vmem>>, vector<40x128xbf16>
    %cst = arith.constant dense<0.000000e+00> : vector<8x128xf32>
    %5 = tpu.matmul %3, %4, %cst {dimension_numbers = #tpu.dot_dimension_numbers<[1], [0], [0], [1], [0, 0, 1, 1], [], []>} : vector<8x40xbf16>, vector<40x128xbf16>, vector<8x128xf32> -> vector<8x128xf32>
    %c0_4 = arith.constant 0 : index
    %c0_5 = arith.constant 0 : index
    %6 = vector.load %arg3[%c0_4, %c0_5] : memref<8x128xf32, #tpu.memory_space<vmem>>, vector<8x128xf32>
    tpu.vector_store %arg3[%c0_4, %c0_5], %5 {strides = array<i32>} : memref<8x128xf32, #tpu.memory_space<vmem>>, vector<8x128xf32>,
    %c0_6 = arith.constant 0 : index
    %c0_7 = arith.constant 0 : index
    %7 = vector.load %arg4[%c0_6, %c0_7] : memref<8x1xf32, #tpu.memory_space<vmem>>, vector<8x1xf32>
    %cst_8 = arith.constant dense<0.000000e+00> : vector<8xf32>
    %8 = vector.multi_reduction <add>, %5, %cst_8 [1] : vector<8x128xf32> to vector<8xf32>
    %9 = vector.shape_cast %8 : vector<8xf32> to vector<8x1xf32>
    %10 = arith.addf %7, %9 : vector<8x1xf32>
    %c0_9 = arith.constant 0 : index
    %c0_10 = arith.constant 0 : index
    %11 = vector.load %arg4[%c0_9, %c0_10] : memref<8x1xf32, #tpu.memory_space<vmem>>, vector<8x1xf32>
    tpu.vector_store %arg4[%c0_9, %c0_10], %10 {strides = array<i32>} : memref<8x1xf32, #tpu.memory_space<vmem>>, vector<8x1xf32>,
    %c0_11 = arith.constant 0 : index
    %c0_12 = arith.constant 0 : index
    %12 = vector.load %arg5[%c0_11, %c0_12] : memref<8x1xf32, #tpu.memory_space<vmem>>, vector<8x1xf32>
    %13 = arith.mulf %5, %5 : vector<8x128xf32>
    %cst_13 = arith.constant dense<0.000000e+00> : vector<8xf32>
    %14 = vector.multi_reduction <add>, %13, %cst_13 [1] : vector<8x128xf32> to vector<8xf32>
    %15 = vector.shape_cast %14 : vector<8xf32> to vector<8x1xf32>
    %16 = arith.addf %12, %15 : vector<8x1xf32>
    %c0_14 = arith.constant 0 : index
    %c0_15 = arith.constant 0 : index
    %17 = vector.load %arg5[%c0_14, %c0_15] : memref<8x1xf32, #tpu.memory_space<vmem>>, vector<8x1xf32>
    tpu.vector_store %arg5[%c0_14, %c0_15], %16 {strides = array<i32>} : memref<8x1xf32, #tpu.memory_space<vmem>>, vector<8x1xf32>,
    return
  }
  func.func @transform_0(%arg0: i32) -> (i32, i32) {
    %c0_i32 = arith.constant 0 : i32
    %c0_i32_0 = arith.constant 0 : i32
    return %c0_i32, %arg0 : i32, i32
  }
  func.func @transform_1(%arg0: i32) -> (i32, i32) {
    %c0_i32 = arith.constant 0 : i32
    %c0_i32_0 = arith.constant 0 : i32
    %c0_i32_1 = arith.constant 0 : i32
    return %c0_i32, %c0_i32_0 : i32, i32
  }
  func.func @transform_2(%arg0: i32) -> (i32, i32) {
    %c0_i32 = arith.constant 0 : i32
    %c0_i32_0 = arith.constant 0 : i32
    return %c0_i32, %arg0 : i32, i32
  }
  func.func @transform_3(%arg0: i32) -> (i32, i32) {
    %c0_i32 = arith.constant 0 : i32
    %c0_i32_0 = arith.constant 0 : i32
    %c0_i32_1 = arith.constant 0 : i32
    return %c0_i32, %c0_i32_0 : i32, i32
  }
  func.func @transform_4(%arg0: i32) -> (i32, i32) {
    %c0_i32 = arith.constant 0 : i32
    %c0_i32_0 = arith.constant 0 : i32
    %c0_i32_1 = arith.constant 0 : i32
    return %c0_i32, %c0_i32_0 : i32, i32
  }
}

</mosaic_0001>

<bundles_post_ra>
// kernel: tpu_custom_call.1
= control target key start
LH: loop header
LB: loop body
LE: loop exit
PB: predicated region body
PF: predicated region fallthrough
CT: control target
= control target key end

     0   :  { %10 = vsyncpa [#allocation3], 0  ;;  %s291_s0 = inlined_call_operand.hbm [shape: bf16[40,128], index: 0, kind: input, shape index: {}]   ;;  %s292_s1 = inlined_call_operand.hbm [shape: bf16[8,40], index: 1, kind: input, shape index: {}]   ;;  %s293_s2 = inlined_call_operand.hbm [shape: f32[8,128], index: 2, kind: output, shape index: {0}]   ;;  %s294_s3 = inlined_call_operand.vmem [shape: f32[8,1], index: 3, kind: output, shape index: {1}]   ;;  %s295_s4 = inlined_call_operand.vmem [shape: f32[8,1], index: 4, kind: output, shape index: {2}]  }
   0x1   :  { %11 = vsyncpa [#allocation6], 0 }
   0x2   :  { %12 = vsyncpa [#allocation4], 0  ;;  %s17_s17 = sshll.u32 %s291_s0, 4  ;;  %s229_s18 = smov [#allocation2]   ;;  %s18_s17 = int_to_ptr.hbm [resolvable:$true] %s17_s17 }
   0x3   :  { %s19_s19 = sshll.u32 %s229_s18, 4  ;;  %s31_s22 = sshll.u32 %s292_s1, 4  ;;  %s20_s19 = int_to_ptr.vmem [resolvable:$true] %s19_s19  ;;  %s32_s22 = int_to_ptr.hbm [resolvable:$true] %s31_s22 }
   0x4   :  { %s230_s23 = smov 64   ;;  %s231_s24 = smov 4  }
   0x5   :  { %25 = dma.hbm_to_vmem [thread:$0]  %s18_s17, 320, %s20_s19, [#allocation3], %s230_s23, %s230_s23, %s231_s24  }
   0x6   :  { %s232_s25 = smov [#allocation5]  }
   0x7   :  { %s33_s26 = sshll.u32 %s232_s25, 4  ;;  %s34_s26 = int_to_ptr.vmem [resolvable:$true] %s33_s26 }
   0x8   :  { %36 = dma.hbm_to_vmem [thread:$0]  %s32_s22, 64, %s34_s26, [#allocation6]  }
   0x9   :  { %223 = dma.done.wait [#allocation3], 320  }
   0xa   :  { %224 = vsyncadd [#allocation3], 4294966976 }
   0xb   :  { %225 = dma.done.wait [#allocation6], 64  }
   0xc   :  { %226 = vsyncadd [#allocation6], 4294967232  ;;  %v58_v0 = vld [vmem:[#allocation2 + $0x10] sm:$0xf]  ;;  %vm78_vm0 = vcmask 1043456   ;;  %v144_v4 = vld [vmem:[#allocation2 + $0x8] sm:$0xff] }
   0xd   :  { %v68_v1 = vunpack.c.l.b16 %v58_v0  ;;  %v143_v5 = vld [vmem:[#allocation2] sm:$0xff]  ;;  %v53_v6 = vld [vmem:[#allocation5] sm:$0xf]  ;;  %vm74_vm1 = vcmask 326656   ;;  %vm50_vm2 = vcmask 7168   ;;  %v233_v7 = vmov 0.0  }
   0xe   :  { %51 = vst.msk [vmem:[%s294_s3] sm:$0xff] %vm50_vm2, %v233_v7  ;;  %s234_s29 = smov [#allocation7]   ;;  %s115_s7 = sshll.u32 %s293_s2, 4  ;;  %s116_s7 = int_to_ptr.hbm [resolvable:$true] %s115_s7 }
   0xf   :  { %v71_v2 = vpack.c.b16 %v68_v1, %v68_v1  ;;  %52 = vst.msk [vmem:[%s295_s4] sm:$0xff] %vm50_vm2, %v233_v7  ;;  %s113_s30 = sshll.u32 %s234_s29, 4  ;;  %s114_s30 = int_to_ptr.vmem [resolvable:$true] %s113_s30 }
  0x11   :  { %v80_v3 = vsel %vm78_vm0, %v71_v2, 0 }
  0x12   :  { %87 = vmatpush.bf16.msra.mxu0 %v80_v3 }
  0x15   :  { %v96_v11 = vld [vmem:[%s294_s3] sm:$0xff] }
  0x16   :  { %88 = vmatpush.bf16.msra.mxu0 %v144_v4  ;;  %v102_v14 = vld [vmem:[%s295_s4] sm:$0xff] }
  0x1a   :  { %89 = vmatpush.bf16.msra.mxu0 %v143_v5 }
  0x1d   :  { %142 = vmatmul.msk.bf16.vlgmr.msra.gmra.mxu0 %vm74_vm1, %v53_v6 }
  0x9a   :  { %v91_v8 = vpop.f32.mrf.mxu0 }
  0x9b   :  { %95 = vst [vmem:[#allocation7] sm:$0xff] %v91_v8  ;;  %97 = vadd.xlane.f32.xlu0 %v91_v8  ;;  %v103_v9 = vmul.f32 %v91_v8, %v91_v8 }
  0x9c   :  { %118 = dma.vmem_to_hbm [thread:$0]  %s114_s30, 128, %s116_s7, [#allocation4]  }
  0xa2   :  { %v93_v10 = vpop.f32.mrf.mxu0 }
  0xa3   :  { %104 = vadd.xlane.f32.xlu0 %v103_v9 }
 0x10e   :  { %v98_v12 = vpop.xlane.xlu0 %97 }
 0x10f   :  { %v99_v13 = vadd.f32 %v98_v12, %v96_v11 }
 0x111   :  { %101 = vst.msk [vmem:[%s294_s3] sm:$0xff] %vm50_vm2, %v99_v13 }
 0x116   :  { %v105_v15 = vpop.xlane.xlu0 %104 }
 0x117   :  { %v106_v16 = vadd.f32 %v105_v15, %v102_v14 }
 0x119   :  { %107 = vst.msk [vmem:[%s295_s4] sm:$0xff] %vm50_vm2, %v106_v16 }
 0x11a   :  { %227 = dma.done.wait [#allocation4], 128  }
 0x11b   :  { %228 = vsyncadd [#allocation4], 4294967168 }
 0x11c   :  { %131 = vsyncpa [#allocation3], 1 }
 0x11d   :  { %132 = vsyncpa [#allocation6], 1 }
 0x11e   :  { %133 = vsyncpa [#allocation4], 1 }

</bundles_post_ra>
